<compile_context>
chip_gen: v7x
topology: tpu7x:2x2x1
jax: 0.10.0
libtpu: 0.0.40
codegen_flags: <defaults>
</compile_context>

<pallas_src>
import jax
import jax.numpy as jnp
from jax import lax
from jax.experimental import pallas as pl
from jax.experimental.pallas import tpu as pltpu


def discriminator_kernel(x_ref,
                         w1_ref, b1_ref,
                         w2_ref, b2_ref,
                         w3_ref, b3_ref,
                         w4row_ref, b4_ref,
                         out_ref):
    """Fused 4-layer MLP: 3x (Linear + LeakyReLU(0.2)) + final Linear."""

    def leaky_relu(h):
        # slope 0.2 => max(h, 0.2*h) is exactly LeakyReLU(0.2); 2 VALU ops.
        return jnp.maximum(h, 0.2 * h)

    # Cast in VMEM (x is streamed from HBM as f32; no wrapper-side cast pass).
    x = x_ref[...].astype(jnp.bfloat16)          # (tile, im_dim) bf16

    # Block 1: Linear(im_dim -> hidden*4) + LeakyReLU   (bf16 in, f32 acc)
    h = jnp.dot(x, w1_ref[...], preferred_element_type=jnp.float32) + b1_ref[...]
    h = leaky_relu(h)

    # Block 2: Linear(hidden*4 -> hidden*2) + LeakyReLU
    h = jnp.dot(h.astype(jnp.bfloat16), w2_ref[...],
                preferred_element_type=jnp.float32) + b2_ref[...]
    h = leaky_relu(h)

    # Block 3: Linear(hidden*2 -> hidden) + LeakyReLU
    h = jnp.dot(h.astype(jnp.bfloat16), w3_ref[...],
                preferred_element_type=jnp.float32) + b3_ref[...]
    h = leaky_relu(h)

    # Final: Linear(hidden -> 1), computed directly into a lane-dense (1, tile)
    # layout by contracting the hidden axis of both operands
    # (w4row: (1, hidden) f32, h: (tile, hidden) f32).
    logits = lax.dot_general(
        w4row_ref[...], h,
        dimension_numbers=(((1,), (1,)), ((), ())),
        preferred_element_type=jnp.float32)                    # (1, tile)
    out_ref[...] = (logits + b4_ref[...]).astype(out_ref.dtype)


def _choose_batch_tile(B, preferred):
    """grid=1 with tile=B while the whole batch fits in one preferred-sized
    tile (no pointless grid splits on 1-TC chips / tiny batches); otherwise
    128-aligned tiles of `preferred` rows (keeps the lane-dense (1, tile)
    output block legal and the MXU M-dimension full)."""
    preferred = max(128, (int(preferred) // 128) * 128)   # multiple of 128
    if B <= preferred:
        return B, 1                     # single full-array block (always legal)
    return preferred, pl.cdiv(B, preferred)


def discriminator_forward(x, kparams, *, preferred_batch_tile=256):
    """x: (B, im_dim) float32, kparams from prepare_params() -> (B, 1) float32.

    preferred_batch_tile: sweepable (e.g. 256 vs 512 on v6e for large batches).
    """
    B, im_dim = x.shape
    w1, b1 = kparams["w1"], kparams["b1"]
    w2, b2 = kparams["w2"], kparams["b2"]
    w3, b3 = kparams["w3"], kparams["b3"]
    w4row, b4 = kparams["w4row"], kparams["b4"]
    d1, d2, d3 = w1.shape[1], w2.shape[1], w3.shape[1]

    tile, grid = _choose_batch_tile(B, preferred_batch_tile)
    n_pad = grid * tile   # output slab width; padded tail sliced off below

    # Weights/biases: one full-array block each, constant index_map -> fetched
    # once and kept resident in VMEM across all grid steps.
    full = lambda shape: pl.BlockSpec(shape, lambda i: (0,) * len(shape))

    # Rough VMEM footprint (double-buffered specs); only raise the scoped
    # limit once we approach v5e's 16 MiB default.  Cap below v7x's 64 MiB.
    est = (2 * tile * im_dim * 4                               # x tile, f32
           + 2 * tile * 4                                      # out tile, f32
           + 2 * 2 * (im_dim * d1 + d1 * d2 + d2 * d3)         # bf16 weights
           + 2 * 4 * (d1 + d2 + 2 * d3 + 1))                   # f32 biases/row
    vmem_limit = min(2 * est, 60 << 20) if est > (14 << 20) else None

    out = pl.pallas_call(
        discriminator_kernel,
        out_shape=jax.ShapeDtypeStruct((1, n_pad), jnp.float32),
        grid_spec=pl.GridSpec(
            grid=(grid,),
            in_specs=[
                pl.BlockSpec((tile, im_dim), lambda i: (i, 0)),  # x (streamed, f32)
                full((im_dim, d1)), full((1, d1)),               # layer 1
                full((d1, d2)),     full((1, d2)),               # layer 2
                full((d2, d3)),     full((1, d3)),               # layer 3
                full((1, d3)),      full((1, 1)),                # layer 4 (row)
            ],
            # Lane-dense output: batch on the lane axis -> contiguous stores.
            out_specs=pl.BlockSpec((1, tile), lambda i: (0, i)),
        ),
        compiler_params=pltpu.CompilerParams(
            dimension_semantics=("parallel",),
            vmem_limit_bytes=vmem_limit),
    )(x, w1, b1, w2, b2, w3, b3, w4row, b4)

    # Back to the PyTorch (B, 1) layout; drop any padded tail rows.
    return out.reshape(-1)[:B].reshape(B, 1)


def init_params(key, im_dim, hidden_dim):
    """Deterministic init mirroring nn.Linear shapes (weights stored as (in, out))."""
    dims = [im_dim, hidden_dim * 4, hidden_dim * 2, hidden_dim, 1]
    params = []
    for idx in range(4):
        fan_in, fan_out = dims[idx], dims[idx + 1]
        key, kw, kb = jax.random.split(key, 3)
        bound = 1.0 / jnp.sqrt(fan_in)
        w = jax.random.uniform(kw, (fan_in, fan_out), jnp.float32, -bound, bound)
        b = jax.random.uniform(kb, (1, fan_out), jnp.float32, -bound, bound)
        params.append((w, b))
    return params


def prepare_params(params):
    """One-time conversion of f32 (PyTorch-equivalent) params into the
    kernel-ready operands.  Do this once and reuse across forward calls so the
    bf16 weight casts are not re-done (HBM read+write) every call."""
    (w1, b1), (w2, b2), (w3, b3), (w4, b4) = params
    d3 = w3.shape[1]
    return {
        "w1": w1.astype(jnp.bfloat16), "b1": b1.astype(jnp.float32),
        "w2": w2.astype(jnp.bfloat16), "b2": b2.astype(jnp.float32),
        "w3": w3.astype(jnp.bfloat16), "b3": b3.astype(jnp.float32),
        "w4row": w4.reshape(1, d3).astype(jnp.float32),   # (1, hidden)
        "b4": b4.reshape(1, 1).astype(jnp.float32),
    }


def reference_forward(x, params, mirror_bf16=False):
    """Plain-JAX reference.  With mirror_bf16=True it mimics the kernel's
    numerics (bf16 matmul inputs for the first three layers, f32 accumulation)."""
    h = x
    for li, (w, b) in enumerate(params):
        if mirror_bf16 and li < 3:
            h = jnp.dot(h.astype(jnp.bfloat16), w.astype(jnp.bfloat16),
                        preferred_element_type=jnp.float32) + b
        else:
            h = jnp.dot(h, w, preferred_element_type=jnp.float32) + b
        if li < 3:
            h = jnp.maximum(h, 0.2 * h)
    return h


if __name__ == "__main__":
    # Small shapes consistent with the module: flattened "image" of im_dim
    # features, hidden_dim controlling the MLP widths.
    B, IM_DIM, HIDDEN = 32, 256, 32

    key = jax.random.PRNGKey(0)
    key, kx = jax.random.split(key)
    x = jax.random.normal(kx, (B, IM_DIM), jnp.float32)
    params = init_params(key, IM_DIM, HIDDEN)
    kparams = prepare_params(params)          # cached, reused across calls

    out = discriminator_forward(x, kparams)
    out = jax.block_until_ready(out)
    assert out.shape == (B, 1)

    # Compare against a reference that mirrors the kernel's bf16/f32 numerics.
    ref_bf16 = reference_forward(x, params, mirror_bf16=True)
    assert jnp.allclose(out, ref_bf16, atol=2e-2, rtol=2e-2), "mismatch vs bf16 reference"

    # Loose sanity check against the pure-f32 reference (bf16 cast error only).
    # NOTE: numerics deliberately deviate from the f32 PyTorch module (bf16
    # matmul inputs, f32 accumulation) — fine for a GAN discriminator.
    ref_f32 = reference_forward(x, params, mirror_bf16=False)
    assert jnp.allclose(out, ref_f32, atol=1e-1, rtol=1e-1), "mismatch vs f32 reference"

    print("KERNEL_OK")
</pallas_src>

<mosaic_0001>
module attributes {stable_mosaic.version = 11 : i64} {
  func.func @discriminator_kernel(%arg0: i32, %arg1: memref<32x256xf32, #tpu.memory_space<vmem>>, %arg2: memref<256x128xbf16, #tpu.memory_space<vmem>>, %arg3: memref<1x128xf32, #tpu.memory_space<vmem>>, %arg4: memref<128x64xbf16, #tpu.memory_space<vmem>>, %arg5: memref<1x64xf32, #tpu.memory_space<vmem>>, %arg6: memref<64x32xbf16, #tpu.memory_space<vmem>>, %arg7: memref<1x32xf32, #tpu.memory_space<vmem>>, %arg8: memref<1x32xf32, #tpu.memory_space<vmem>>, %arg9: memref<1x1xf32, #tpu.memory_space<vmem>>, %arg10: memref<1x32xf32, #tpu.memory_space<vmem>>) attributes {dimension_semantics = [#tpu.dimension_semantics<parallel>], iteration_bounds = array<i64: 1>, scalar_prefetch = 0 : i64, scratch_operands = 0 : i64, tpu.core_type = #tpu.core_type<tc>, window_params = [{transform_indices = @transform_0, window_bounds = array<i64: 32, 256>}, {pipeline_mode = #tpu.pipeline_mode<synchronous>, transform_indices = @transform_1, window_bounds = array<i64: 256, 128>}, {pipeline_mode = #tpu.pipeline_mode<synchronous>, transform_indices = @transform_2, window_bounds = array<i64: 1, 128>}, {pipeline_mode = #tpu.pipeline_mode<synchronous>, transform_indices = @transform_3, window_bounds = array<i64: 128, 64>}, {pipeline_mode = #tpu.pipeline_mode<synchronous>, transform_indices = @transform_4, window_bounds = array<i64: 1, 64>}, {pipeline_mode = #tpu.pipeline_mode<synchronous>, transform_indices = @transform_5, window_bounds = array<i64: 64, 32>}, {pipeline_mode = #tpu.pipeline_mode<synchronous>, transform_indices = @transform_6, window_bounds = array<i64: 1, 32>}, {pipeline_mode = #tpu.pipeline_mode<synchronous>, transform_indices = @transform_7, window_bounds = array<i64: 1, 32>}, {pipeline_mode = #tpu.pipeline_mode<synchronous>, transform_indices = @transform_8, window_bounds = array<i64: 1, 1>}, {transform_indices = @transform_9, window_bounds = array<i64: 1, 32>}]} {
    %c0 = arith.constant 0 : index
    %c0_0 = arith.constant 0 : index
    %0 = vector.load %arg1[%c0, %c0_0] : memref<32x256xf32, #tpu.memory_space<vmem>>, vector<32x256xf32>
    %1 = arith.truncf %0 : vector<32x256xf32> to vector<32x256xbf16>
    %c0_1 = arith.constant 0 : index
    %c0_2 = arith.constant 0 : index
    %2 = vector.load %arg2[%c0_1, %c0_2] : memref<256x128xbf16, #tpu.memory_space<vmem>>, vector<256x128xbf16>
    %cst = arith.constant dense<0.000000e+00> : vector<32x128xf32>
    %3 = tpu.matmul %1, %2, %cst {dimension_numbers = #tpu.dot_dimension_numbers<[1], [0], [0], [1], [0, 0, 1, 1], [], []>} : vector<32x256xbf16>, vector<256x128xbf16>, vector<32x128xf32> -> vector<32x128xf32>
    %c0_3 = arith.constant 0 : index
    %c0_4 = arith.constant 0 : index
    %4 = vector.load %arg3[%c0_3, %c0_4] : memref<1x128xf32, #tpu.memory_space<vmem>>, vector<1x128xf32>
    %5 = vector.broadcast %4 : vector<1x128xf32> to vector<32x128xf32>
    %6 = arith.addf %3, %5 : vector<32x128xf32>
    %cst_5 = arith.constant 2.000000e-01 : f32
    %7 = vector.broadcast %cst_5 : f32 to vector<32x128xf32>
    %8 = arith.mulf %7, %6 : vector<32x128xf32>
    %9 = arith.maximumf %6, %8 : vector<32x128xf32>
    %10 = arith.truncf %9 : vector<32x128xf32> to vector<32x128xbf16>
    %c0_6 = arith.constant 0 : index
    %c0_7 = arith.constant 0 : index
    %11 = vector.load %arg4[%c0_6, %c0_7] : memref<128x64xbf16, #tpu.memory_space<vmem>>, vector<128x64xbf16>
    %cst_8 = arith.constant dense<0.000000e+00> : vector<32x64xf32>
    %12 = tpu.matmul %10, %11, %cst_8 {dimension_numbers = #tpu.dot_dimension_numbers<[1], [0], [0], [1], [0, 0, 1, 1], [], []>} : vector<32x128xbf16>, vector<128x64xbf16>, vector<32x64xf32> -> vector<32x64xf32>
    %c0_9 = arith.constant 0 : index
    %c0_10 = arith.constant 0 : index
    %13 = vector.load %arg5[%c0_9, %c0_10] : memref<1x64xf32, #tpu.memory_space<vmem>>, vector<1x64xf32>
    %14 = vector.broadcast %13 : vector<1x64xf32> to vector<32x64xf32>
    %15 = arith.addf %12, %14 : vector<32x64xf32>
    %cst_11 = arith.constant 2.000000e-01 : f32
    %16 = vector.broadcast %cst_11 : f32 to vector<32x64xf32>
    %17 = arith.mulf %16, %15 : vector<32x64xf32>
    %18 = arith.maximumf %15, %17 : vector<32x64xf32>
    %19 = arith.truncf %18 : vector<32x64xf32> to vector<32x64xbf16>
    %c0_12 = arith.constant 0 : index
    %c0_13 = arith.constant 0 : index
    %20 = vector.load %arg6[%c0_12, %c0_13] : memref<64x32xbf16, #tpu.memory_space<vmem>>, vector<64x32xbf16>
    %cst_14 = arith.constant dense<0.000000e+00> : vector<32x32xf32>
    %21 = tpu.matmul %19, %20, %cst_14 {dimension_numbers = #tpu.dot_dimension_numbers<[1], [0], [0], [1], [0, 0, 1, 1], [], []>} : vector<32x64xbf16>, vector<64x32xbf16>, vector<32x32xf32> -> vector<32x32xf32>
    %c0_15 = arith.constant 0 : index
    %c0_16 = arith.constant 0 : index
    %22 = vector.load %arg7[%c0_15, %c0_16] : memref<1x32xf32, #tpu.memory_space<vmem>>, vector<1x32xf32>
    %23 = vector.broadcast %22 : vector<1x32xf32> to vector<32x32xf32>
    %24 = arith.addf %21, %23 : vector<32x32xf32>
    %cst_17 = arith.constant 2.000000e-01 : f32
    %25 = vector.broadcast %cst_17 : f32 to vector<32x32xf32>
    %26 = arith.mulf %25, %24 : vector<32x32xf32>
    %27 = arith.maximumf %24, %26 : vector<32x32xf32>
    %c0_18 = arith.constant 0 : index
    %c0_19 = arith.constant 0 : index
    %28 = vector.load %arg8[%c0_18, %c0_19] : memref<1x32xf32, #tpu.memory_space<vmem>>, vector<1x32xf32>
    %cst_20 = arith.constant dense<0.000000e+00> : vector<1x32xf32>
    %29 = tpu.matmul %28, %27, %cst_20 {dimension_numbers = #tpu.dot_dimension_numbers<[1], [1], [0], [0], [0, 0, 1, 0], [], []>} : vector<1x32xf32>, vector<32x32xf32>, vector<1x32xf32> -> vector<1x32xf32>
    %c0_21 = arith.constant 0 : index
    %c0_22 = arith.constant 0 : index
    %30 = vector.load %arg9[%c0_21, %c0_22] : memref<1x1xf32, #tpu.memory_space<vmem>>, vector<1x1xf32>
    %31 = vector.broadcast %30 : vector<1x1xf32> to vector<1x32xf32>
    %32 = arith.addf %29, %31 : vector<1x32xf32>
    %c0_23 = arith.constant 0 : index
    %c0_24 = arith.constant 0 : index
    %33 = vector.load %arg10[%c0_23, %c0_24] : memref<1x32xf32, #tpu.memory_space<vmem>>, vector<1x32xf32>
    tpu.vector_store %arg10[%c0_23, %c0_24], %32 {strides = array<i32>} : memref<1x32xf32, #tpu.memory_space<vmem>>, vector<1x32xf32>,
    return
  }
  func.func @transform_0(%arg0: i32) -> (i32, i32) {
    %c0_i32 = arith.constant 0 : i32
    %c0_i32_0 = arith.constant 0 : i32
    return %arg0, %c0_i32 : i32, i32
  }
  func.func @transform_1(%arg0: i32) -> (i32, i32) {
    %c0_i32 = arith.constant 0 : i32
    %c0_i32_0 = arith.constant 0 : i32
    %c0_i32_1 = arith.constant 0 : i32
    return %c0_i32, %c0_i32_0 : i32, i32
  }
  func.func @transform_2(%arg0: i32) -> (i32, i32) {
    %c0_i32 = arith.constant 0 : i32
    %c0_i32_0 = arith.constant 0 : i32
    %c0_i32_1 = arith.constant 0 : i32
    return %c0_i32, %c0_i32_0 : i32, i32
  }
  func.func @transform_3(%arg0: i32) -> (i32, i32) {
    %c0_i32 = arith.constant 0 : i32
    %c0_i32_0 = arith.constant 0 : i32
    %c0_i32_1 = arith.constant 0 : i32
    return %c0_i32, %c0_i32_0 : i32, i32
  }
  func.func @transform_4(%arg0: i32) -> (i32, i32) {
    %c0_i32 = arith.constant 0 : i32
    %c0_i32_0 = arith.constant 0 : i32
    %c0_i32_1 = arith.constant 0 : i32
    return %c0_i32, %c0_i32_0 : i32, i32
  }
  func.func @transform_5(%arg0: i32) -> (i32, i32) {
    %c0_i32 = arith.constant 0 : i32
    %c0_i32_0 = arith.constant 0 : i32
    %c0_i32_1 = arith.constant 0 : i32
    return %c0_i32, %c0_i32_0 : i32, i32
  }
  func.func @transform_6(%arg0: i32) -> (i32, i32) {
    %c0_i32 = arith.constant 0 : i32
    %c0_i32_0 = arith.constant 0 : i32
    %c0_i32_1 = arith.constant 0 : i32
    return %c0_i32, %c0_i32_0 : i32, i32
  }
  func.func @transform_7(%arg0: i32) -> (i32, i32) {
    %c0_i32 = arith.constant 0 : i32
    %c0_i32_0 = arith.constant 0 : i32
    %c0_i32_1 = arith.constant 0 : i32
    return %c0_i32, %c0_i32_0 : i32, i32
  }
  func.func @transform_8(%arg0: i32) -> (i32, i32) {
    %c0_i32 = arith.constant 0 : i32
    %c0_i32_0 = arith.constant 0 : i32
    %c0_i32_1 = arith.constant 0 : i32
    return %c0_i32, %c0_i32_0 : i32, i32
  }
  func.func @transform_9(%arg0: i32) -> (i32, i32) {
    %c0_i32 = arith.constant 0 : i32
    %c0_i32_0 = arith.constant 0 : i32
    return %c0_i32, %arg0 : i32, i32
  }
}

</mosaic_0001>

<bundles_post_ra>
// kernel: tpu_custom_call.1
= control target key start
LH: loop header
LB: loop body
LE: loop exit
PB: predicated region body
PF: predicated region fallthrough
CT: control target
= control target key end

     0   :  { %s1007_s0 = inlined_call_operand.hbm [shape: f32[32,256], index: 0, kind: input, shape index: {}]   ;;  %s1008_s1 = inlined_call_operand.vmem [shape: bf16[256,128], index: 1, kind: input, shape index: {}]   ;;  %s1009_s2 = inlined_call_operand.vmem [shape: f32[1,128], index: 2, kind: input, shape index: {}]   ;;  %s1010_s3 = inlined_call_operand.vmem [shape: bf16[128,64], index: 3, kind: input, shape index: {}]   ;;  %s1011_s4 = inlined_call_operand.vmem [shape: f32[1,64], index: 4, kind: input, shape index: {}]   ;;  %s1012_s5 = inlined_call_operand.vmem [shape: bf16[64,32], index: 5, kind: input, shape index: {}]   ;;  %s1013_s6 = inlined_call_operand.vmem [shape: f32[1,32], index: 6, kind: input, shape index: {}]   ;;  %s1014_s7 = inlined_call_operand.vmem [shape: f32[1,32], index: 7, kind: input, shape index: {}]   ;;  %s1015_s8 = inlined_call_operand.<no memory space> [shape: f32[1,1], index: 8, kind: input, shape index: {}]   ;;  %s1016_s9 = inlined_call_operand.hbm [shape: f32[1,32], index: 9, kind: output, shape index: {}]  }
   0x1   :  { %v14_v0 = vstv %s1015_s8 }
   0x2   :  { %15 = vst [vmem:[#allocation2] sm:$0x1] %v14_v0 }
   0x3   :  { %16 = vsyncpa [#allocation4], 0 }
   0x4   :  { %17 = vsyncpa [#allocation5], 0  ;;  %s826_s11 = smov [#allocation3]   ;;  %s778_s15 = scalar_lea.hbm %s1007_s0, 1024 }
   0x5   :  { %s23_s12 = sshll.u32 %s826_s11, 4  ;;  %p779_p0 = scmp.ne.s32.totalorder %s1007_s0, %s778_s15  ;;  %s24_s12 = int_to_ptr.vmem [resolvable:$true] %s23_s12 }
   0x6   :  { %p782_p1 = scmp.lt.u32.totalorder %s778_s15, %s1007_s0 }
   0x8   :  { %p784_p2 = pnand %p782_p1, %p779_p0 }
   0xa   :  { %787 = shalt.err (!%p784_p2)
}
   0xb   :  { %s788_s8 = scalar_lea.vmem %s24_s12, 1024  ;;  %p793_p4 = scmp.lt.s32.totalorder %s24_s12, %s24_s12 }
   0xc   :  { %p789_p3 = scmp.ne.s32.totalorder %s24_s12, %s788_s8  ;;  %p794_p5 = scmp.lt.s32.totalorder %s788_s8, %s788_s8 }
   0xe   :  { %p795_p6 = por %p794_p5, %p793_p4 }
  0x10   :  { %p796_p7 = pnand %p795_p6, %p789_p3 }
  0x12   :  { %799 = shalt.err (!%p796_p7)
}
  0x13   :  { %s827_s20 = smov 256   ;;  %s828_s21 = smov 16  }
  0x14   :  { %29 = dma.hbm_to_vmem [thread:$0]  %s1007_s0, 1024, %s24_s12, [#allocation4], %s827_s20, %s827_s20, %s828_s21  }
  0x15   :  { %822 = dma.done.wait [#allocation4], 1024  }
  0x16   :  { %823 = vsyncadd [#allocation4], 4294966272  ;;  %v750_v1 = vld [vmem:[%s1008_s1 + $0x40] sm:$0xff]   ;;  %v752_v3 = vld [vmem:[%s1008_s1 + $0x48] sm:$0xff]   ;;  %vm425_vm0 = vcmask 523264   ;;  %vm830_vm1 = vmmov 0  }
  0x17   :  { %v751_v2 = vld [vmem:[%s1008_s1] sm:$0xff]   ;;  %641 = vmatprep.subr.bf16.mxu0 %v750_v1  ;;  %v753_v4 = vld [vmem:[%s1008_s1 + $0x8] sm:$0xff]   ;;  %v754_v5 = vld [vmem:[%s1008_s1 + $0x50] sm:$0xff]   ;;  %vm500_vm2 = vcmask 261120   ;;  %s833_s14 = smov [#allocation6]   ;;  %vm586_vm4 = vcmask 253952  }
  0x18   :  { %642 = vmatpush3.bf16.msra.mxu0 %v751_v2  ;;  %v755_v6 = vld [vmem:[%s1008_s1 + $0x10] sm:$0xff]   ;;  %v756_v7 = vld [vmem:[%s1008_s1 + $0x58] sm:$0xff]   ;;  %v758_v9 = vld [vmem:[%s1008_s1 + $0x60] sm:$0xff]   ;;  %s594_s15 = sshll.u32 %s833_s14, 4  ;;  %s595_s15 = int_to_ptr.vmem [resolvable:$true] %s594_s15 }
  0x19   :  { %643 = vmatprep.subr.bf16.mxu0 %v752_v3  ;;  %v757_v8 = vld [vmem:[%s1008_s1 + $0x18] sm:$0xff]   ;;  %v759_v10 = vld [vmem:[%s1008_s1 + $0x20] sm:$0xff]   ;;  %v760_v11 = vld [vmem:[%s1008_s1 + $0x68] sm:$0xff]   ;;  %s800_s16 = scalar_lea.vmem %s595_s15, 16  ;;  %s804_s17 = scalar_lea.vmem %s595_s15, 32 }
  0x1a   :  { %v51_v12 = vld [vmem:[#allocation3 + $0x8] sm:$0xff]  ;;  %v53_v13 = vld [vmem:[#allocation3 + $0x18] sm:$0xff]  ;;  %v50_v23 = vld [vmem:[#allocation3] sm:$0xff]  ;;  %p801_p8 = scmp.ne.s32.totalorder %s595_s15, %s800_s16  ;;  %p805_p9 = scmp.lt.s32.totalorder %s595_s15, %s595_s15 }
  0x1b   :  { %v59_v14 = vpack.c.bf16 %v53_v13, %v51_v12  ;;  %v761_v15 = vld [vmem:[%s1008_s1 + $0x28] sm:$0xff]   ;;  %v762_v16 = vld [vmem:[%s1008_s1 + $0x70] sm:$0xff]   ;;  %v766_v17 = vld [vmem:[%s1010_s3] sm:$0xff]   ;;  %p806_p10 = scmp.lt.s32.totalorder %s804_s17, %s800_s16 }
  0x1c   :  { %644 = vmatpush3.bf16.msra.mxu0 %v753_v4  ;;  %v767_v18 = vld [vmem:[%s1010_s3 + $0x8] sm:$0xff]   ;;  %v763_v19 = vld [vmem:[%s1008_s1 + $0x30] sm:$0xff]   ;;  %690 = vmatprep.subr.bf16.mxu1 %v766_v17  ;;  %v764_v21 = vld [vmem:[%s1008_s1 + $0x78] sm:$0xff]  }
  0x1d   :  { %645 = vmatprep.subr.bf16.mxu0 %v754_v5  ;;  %229 = vmatprep.mubr.bf16.mxu0 %v59_v14  ;;  %v768_v20 = vld [vmem:[%s1010_s3 + $0x10] sm:$0xff]   ;;  %v765_v22 = vld [vmem:[%s1008_s1 + $0x38] sm:$0xff]   ;;  %v54_v29 = vld [vmem:[#allocation3 + $0x20] sm:$0xff]  ;;  %p807_p11 = por %p806_p10, %p805_p9 }
  0x1e   :  { %691 = vmatpush3.bf16.msra.mxu1 %v766_v17  ;;  %v52_v24 = vld [vmem:[#allocation3 + $0x10] sm:$0xff]  ;;  %v55_v25 = vld [vmem:[#allocation3 + $0x28] sm:$0xff]  ;;  %v57_v26 = vld [vmem:[#allocation3 + $0x38] sm:$0xff] }
  0x1f   :  { %692 = vmatprep.subr.bf16.mxu1 %v767_v18  ;;  %v58_v27 = vpack.c.bf16 %v52_v24, %v50_v23  ;;  %v61_v28 = vpack.c.bf16 %v57_v26, %v55_v25  ;;  %v56_v30 = vld [vmem:[#allocation3 + $0x30] sm:$0xff]  ;;  %v770_v33 = vld [vmem:[%s1010_s3 + $0x20] sm:$0xff]   ;;  %v771_v34 = vld [vmem:[%s1010_s3 + $0x28] sm:$0xff]   ;;  %v829_v23 = vmov 0.0|0.0   ;;  %v831_v24 = vmov 0.0   ;;  %p808_p12 = pnand %p807_p11, %p801_p8 }
  0x20   :  { %646 = vmatpush3.bf16.msra.mxu0 %v755_v6  ;;  %v60_v31 = vpack.c.bf16 %v56_v30, %v54_v29  ;;  %v769_v32 = vld [vmem:[%s1010_s3 + $0x18] sm:$0xff]   ;;  %v772_v35 = vld [vmem:[%s1010_s3 + $0x30] sm:$0xff]   ;;  %v774_v37 = vld [vmem:[%s1012_s5] sm:$0xff]   ;;  %v832_v26 = vmov 0  }
  0x21   :  { %647 = vmatprep.subr.bf16.mxu0 %v756_v7  ;;  %v773_v36 = vld [vmem:[%s1010_s3 + $0x38] sm:$0xff]   ;;  %v603_v39 = vld [vmem:[%s1009_s2] ss:$0 sm:$0xff]  ;;  %v775_v1 = vld [vmem:[%s1012_s5 + $0x8] sm:$0xff]   ;;  %749 = vset.pattern.permute.xlu0 %v832_v26 }
  0x22   :  { %693 = vmatpush3.bf16.msra.mxu1 %v767_v18  ;;  %v776_v2 = vld [vmem:[%s1012_s5 + $0x10] sm:$0xff]   ;;  %v777_v3 = vld [vmem:[%s1012_s5 + $0x18] sm:$0xff]   ;;  %v620_v4 = vld [vmem:[%s1011_s4] ss:$0 sm:$0xff] }
  0x23   :  { %694 = vmatprep.subr.bf16.mxu1 %v768_v20  ;;  %v490_v25 = vld [vmem:[#allocation2] sm:$0x1]  ;;  %vm735_vm3 = vmpackc.low %vm500_vm2, %vm500_vm2 }
  0x24   :  { %648 = vmatpush3.bf16.msra.mxu0 %v757_v8  ;;  %493 = vperm.xlu0 %749, %v490_v25  }
  0x25   :  { %649 = vmatprep.subr.bf16.mxu0 %v758_v9 }
  0x26   :  { %695 = vmatpush3.bf16.msra.mxu1 %v768_v20 }
  0x27   :  { %696 = vmatprep.subr.bf16.mxu1 %v769_v32 }
  0x28   :  { %650 = vmatpush3.bf16.msra.mxu0 %v759_v10 }
  0x29   :  { %651 = vmatprep.subr.bf16.mxu0 %v760_v11 }
  0x2a   :  { %697 = vmatpush3.bf16.msra.mxu1 %v769_v32 }
  0x2b   :  { %698 = vmatprep.subr.bf16.mxu1 %v770_v33 }
  0x2c   :  { %652 = vmatpush3.bf16.msra.mxu0 %v761_v15 }
  0x2d   :  { %653 = vmatprep.subr.bf16.mxu0 %v762_v16 }
  0x2e   :  { %699 = vmatpush3.bf16.msra.mxu1 %v770_v33 }
  0x2f   :  { %700 = vmatprep.subr.bf16.mxu1 %v771_v34 }
  0x30   :  { %654 = vmatpush3.bf16.msra.mxu0 %v763_v19 }
  0x31   :  { %655 = vmatprep.subr.bf16.mxu0 %v764_v21 }
  0x32   :  { %701 = vmatpush3.bf16.msra.mxu1 %v771_v34 }
  0x33   :  { %702 = vmatprep.subr.bf16.mxu1 %v772_v35 }
  0x34   :  { %656 = vmatpush3.bf16.msra.mxu0 %v765_v22 }
  0x35   :  { %710 = vmatprep.subr.bf16.mxu0 %v774_v37 }
  0x36   :  { %703 = vmatpush3.bf16.msra.mxu1 %v772_v35 }
  0x37   :  { %230 = vmatmul.mubr.bf16.vlgmr.msra.gmra.mrb[0].mxu0 %v58_v27  ;;  %704 = vmatprep.subr.bf16.mxu1 %v773_v36  ;;  %v629_v27 = vld [vmem:[%s1013_s6] ss:$0 sm:$0xff] }
  0x38   :  { %237 = vmatprep.mubr.bf16.mxu0 %v61_v28  ;;  %711 = vmatpush3.bf16.msra.mxu0 %v774_v37 }
  0x39   :  { %712 = vmatprep.subr.bf16.mxu0 %v775_v1 }
  0x3a   :  { %705 = vmatpush3.bf16.msra.mxu1 %v773_v36 }
  0x3b   :  { %733 = vmatprep.subr.bf16.mxu1 %v829_v23 }
  0x3c   :  { %713 = vmatpush3.bf16.msra.mxu0 %v775_v1 }
  0x3d   :  { %714 = vmatprep.subr.bf16.mxu0 %v776_v2 }
  0x3f   :  { %238 = vmatmul.mubr.bf16.gmra.mrb[4].mxu0 %v60_v31 }
  0x40   :  { %715 = vmatpush3.bf16.msra.mxu0 %v776_v2 }
  0x41   :  { %716 = vmatprep.subr.bf16.mxu0 %v777_v3 }
  0x44   :  { %717 = vmatpush3.bf16.msra.mxu0 %v777_v3 }
 0x10a   :  { %v657_v38 = vpop.f32.mrb[0].mxu0 }
 0x10b   :  { %v658_v40 = vpop.f32.mrb[1].mxu0 }
 0x10c   :  { %v659_v41 = vadd.f32 %v658_v40, %v657_v38  ;;  %v660_v42 = vpop.f32.mrb[2].mxu0 }
 0x10d   :  { %v661_v43 = vpop.f32.mrb[3].mxu0 }
 0x10e   :  { %v232_v44 = vadd.f32 %v659_v41, %v603_v39  ;;  %v662_v45 = vadd.f32 %v661_v43, %v660_v42 }
 0x110   :  { %v235_v46 = vadd.f32 %v662_v45, %v603_v39  ;;  %v246_v47 = vmul.f32 0.2, %v232_v44 }
 0x112   :  { %v663_v48 = vpop.f32.mrb[4].mxu0  ;;  %v247_v49 = vmul.f32 0.2, %v235_v46  ;;  %v250_v53 = vmax.f32 %v232_v44, %v246_v47  ;;  %v496_v47 = vlaneseq }
 0x113   :  { %v664_v50 = vpop.f32.mrb[5].mxu0 }
 0x114   :  { %v665_v51 = vadd.f32 %v664_v50, %v663_v48  ;;  %v666_v52 = vpop.f32.mrb[6].mxu0  ;;  %v251_v54 = vmax.f32 %v235_v46, %v247_v49  ;;  %v489_v46 = vld [vmem:[%s1014_s7] sm:$0x1]  ;;  %v497_v48 = vshrl.u32 %v496_v47, 7  ;;  %v494_v50 = vpop.permute.xlu0 %493 }
 0x115   :  { %v667_v55 = vpop.f32.mrb[7].mxu0 }
 0x116   :  { %v240_v56 = vadd.f32 %v665_v51, %v603_v39  ;;  %v668_v57 = vadd.f32 %v667_v55, %v666_v52  ;;  %v254_v58 = vpack.c.bf16 %v251_v54, %v250_v53  ;;  %v498_v49 = vsub.s32 0, %v497_v48 }
 0x118   :  { %v248_v59 = vmul.f32 0.2, %v240_v56  ;;  %v243_v60 = vadd.f32 %v668_v57, %v603_v39  ;;  %706 = vmatprep.mubr.bf16.mxu1 %v254_v58  ;;  %v499_v51 = vrot.slane %v494_v50, %v498_v49 }
 0x11a   :  { %v249_v61 = vmul.f32 0.2, %v243_v60  ;;  %v252_v62 = vmax.f32 %v240_v56, %v248_v59 }
 0x11c   :  { %v253_v63 = vmax.f32 %v243_v60, %v249_v61 }
 0x11e   :  { %v255_v0 = vpack.c.bf16 %v253_v63, %v252_v62 }
 0x120   :  { %707 = vmatmul.mubr.bf16.vlgmr.msra.gmra.mrb[0].mxu1 %v255_v0 }
 0x121   :  { %730 = vmatprep.mubr.msk.f32.mxu1 %vm830_vm1, %v831_v24 }
 0x1f3   :  { %v708_v5 = vpop.f32.mrb[0].mxu1 }
 0x1f4   :  { %v370_v6 = vadd.f32 %v708_v5, %v620_v4  ;;  %v361_v7 = vpop.f32.mrb[1].mxu1 }
 0x1f5   :  { %v362_v8 = vadd.f32 %v620_v4, %v361_v7  ;;  %v709_v9 = vpop.f32.mrb[2].mxu1 }
 0x1f6   :  { %v378_v10 = vmul.f32 0.2, %v370_v6  ;;  %v373_v11 = vadd.f32 %v709_v9, %v620_v4  ;;  %v364_v12 = vpop.f32.mrb[3].mxu1 }
 0x1f7   :  { %v376_v13 = vmul.f32 0.2, %v362_v8  ;;  %v365_v14 = vadd.f32 %v620_v4, %v364_v12 }
 0x1f8   :  { %v379_v15 = vmul.f32 0.2, %v373_v11  ;;  %v382_v17 = vmax.f32 %v370_v6, %v378_v10 }
 0x1f9   :  { %v377_v16 = vmul.f32 0.2, %v365_v14  ;;  %v380_v19 = vmax.f32 %v362_v8, %v376_v13 }
 0x1fa   :  { %v383_v18 = vmax.f32 %v373_v11, %v379_v15 }
 0x1fb   :  { %v381_v20 = vmax.f32 %v365_v14, %v377_v16 }
 0x1fc   :  { %v385_v21 = vpack.c.bf16 %v383_v18, %v382_v17 }
 0x1fd   :  { %v384_v22 = vpack.c.bf16 %v381_v20, %v380_v19 }
 0x1ff   :  { %718 = vmatprep.mubr.msk.bf16.mxu0 %vm425_vm0, %v384_v22 }
 0x200   :  { %719 = vmatmul.mubr.msk.bf16.vlgmr.msra.gmra.mrb[8].mxu0 %vm425_vm0, %v385_v21 }
 0x2d3   :  { %v720_v28 = vpop.f32.mrb[8].mxu0 }
 0x2d4   :  { %v475_v29 = vadd.f32 %v720_v28, %v629_v27  ;;  %v466_v30 = vpop.f32.mrb[9].mxu0 }
 0x2d5   :  { %v467_v31 = vadd.f32 %v629_v27, %v466_v30  ;;  %v721_v32 = vpop.f32.mrb[10].mxu0 }
 0x2d6   :  { %v483_v33 = vmul.f32 0.2, %v475_v29  ;;  %v478_v34 = vadd.f32 %v721_v32, %v629_v27  ;;  %v469_v35 = vpop.f32.mrb[11].mxu0 }
 0x2d7   :  { %v481_v36 = vmul.f32 0.2, %v467_v31  ;;  %v470_v37 = vadd.f32 %v629_v27, %v469_v35 }
 0x2d8   :  { %v484_v38 = vmul.f32 0.2, %v478_v34  ;;  %v487_v40 = vmax.f32 %v475_v29, %v483_v33 }
 0x2d9   :  { %v482_v39 = vmul.f32 0.2, %v470_v37  ;;  %v485_v42 = vmax.f32 %v467_v31, %v481_v36 }
 0x2da   :  { %v488_v41 = vmax.f32 %v478_v34, %v484_v38 }
 0x2db   :  { %v486_v43 = vmax.f32 %v470_v37, %v482_v39 }
 0x2dc   :  { %v738_v44 = vpack.c.bf16 %v488_v41, %v487_v40 }
 0x2dd   :  { %v734_v45 = vpack.c.bf16 %v486_v43, %v485_v42 }
 0x2df   :  { %736 = vmatpush3.bf16.xpose.msk.msra.mxu1 %vm735_vm3, %v734_v45 }
 0x2e0   :  { %737 = vmatprep.subr.bf16.mxu1 %v829_v23 }
 0x2e7   :  { %740 = vmatpush3.bf16.xpose.msk.msra.mxu1 %vm735_vm3, %v738_v44 }
 0x2ee   :  { %731 = vmatmul.mubr.msk.f32.vlgmr.msra.gmra.mrb[4].mxu1 %vm500_vm2, %v489_v46 }
 0x3c1   :  { %v582_v52 = vpop.f32.mrb[4].mxu1 }
 0x3c2   :  { %v583_v53 = vadd.f32 %v582_v52, %v499_v51  ;;  %v732_v54 = vpop.f32.mrb[5].mxu1 }
 0x3c4   :  { %587 = vst.msk [vmem:[#allocation6] sm:$0x1] %vm586_vm4, %v583_v53 }
 0x3c5   :  { %811 = shalt.err (!%p808_p12)
}
 0x3c6   :  { %s812_s18 = scalar_lea.hbm %s1016_s9, 16 }
 0x3c7   :  { %p813_p13 = scmp.ne.s32.totalorder %s1016_s9, %s812_s18  ;;  %p816_p0 = scmp.lt.u32.totalorder %s812_s18, %s1016_s9 }
 0x3c9   :  { %p818_p1 = pnand %p816_p0, %p813_p13 }
 0x3cb   :  { %821 = shalt.err (!%p818_p1)
}
 0x3cc   :  { %597 = dma.vmem_to_hbm [thread:$0]  %s595_s15, 16, %s1016_s9, [#allocation5]  }
 0x3cd   :  { %824 = dma.done.wait [#allocation5], 16  }
 0x3ce   :  { %825 = vsyncadd [#allocation5], 4294967280 }
 0x3cf   :  { %601 = vsyncpa [#allocation4], 1 }
 0x3d0   :  { %602 = vsyncpa [#allocation5], 1 }

</bundles_post_ra>
